<compile_context>
chip_gen: v5e
topology: v5e:2x2
jax: 0.10.0
libtpu: 0.0.40
codegen_flags: <defaults>
</compile_context>

<pallas_src>
import functools

import jax
import jax.numpy as jnp
from jax.experimental import pallas as pl
from jax.experimental.pallas import tpu as pltpu

_LN_EPS = 1e-5      # PyTorch nn.LayerNorm default
_LANE = 128
_SUBLANE = 8


def _round_up(n, m):
    return ((n + m - 1) // m) * m


def _fused_decoder_kernel(x_ref, *refs, num_hidden, true_dims):
    """Fused forward for one batch tile.

    refs layout: [w0, b0, g0, beta0, w1, b1, g1, beta1, ..., w_out, b_out, o_ref]
    All feature dims are zero-padded to multiples of 128; padded columns of the
    running activation are kept exactly zero so un-masked reductions divided by
    the true width give correct LayerNorm statistics.
    """
    o_ref = refs[-1]
    p = refs[:-1]

    h = x_ref[...].astype(jnp.float32)

    idx = 0
    for li in range(num_hidden):
        w_ref, b_ref, g_ref, beta_ref = p[idx], p[idx + 1], p[idx + 2], p[idx + 3]
        idx += 4
        d_true = true_dims[li]

        # Linear on the MXU: bf16 operands, f32 accumulation.
        y = jnp.dot(h.astype(jnp.bfloat16), w_ref[...].astype(jnp.bfloat16),
                    preferred_element_type=jnp.float32)
        y = y + b_ref[...]            # (1, Dpad) broadcast, hoisted once per layer
        y = jnp.maximum(y, 0.0)       # ReLU (padded cols stay 0)

        # One-pass LayerNorm statistics (padded cols are 0 -> full-width sums OK).
        inv_d = 1.0 / float(d_true)
        s = jnp.sum(y, axis=-1, keepdims=True)
        sq = jnp.sum(y * y, axis=-1, keepdims=True)
        mean = s * inv_d
        var = sq * inv_d - mean * mean
        inv = jax.lax.rsqrt(var + _LN_EPS)
        # gamma/beta are zero-padded -> padded cols of h stay exactly 0.
        h = (y - mean) * inv * g_ref[...] + beta_ref[...]
        # Dropout: eval-mode identity.

    # Output layer: Linear -> Sigmoid (padded cols discarded in the wrapper).
    w_out_ref, b_out_ref = p[idx], p[idx + 1]
    z = jnp.dot(h.astype(jnp.bfloat16), w_out_ref[...].astype(jnp.bfloat16),
                preferred_element_type=jnp.float32)
    z = z + b_out_ref[...]
    o_ref[...] = jax.nn.sigmoid(z).astype(o_ref.dtype)


@functools.partial(jax.jit, static_argnames=("output_shape",))
def dense_decoder_forward(x, hidden_params, out_params, output_shape):
    """DenseDecoder.forward: output_layer(dense_layers(x)).view(B, *output_shape)."""
    batch, d_latent = x.shape
    out_features = output_shape[0] * output_shape[1] * output_shape[2]

    # --- batch tiling (parallel grid axis) ---
    tile_b = min(256, _round_up(batch, _SUBLANE))
    batch_pad = _round_up(batch, tile_b)

    # --- lane-dense zero padding of activations and parameters ---
    d_in_pad = _round_up(d_latent, _LANE)
    x_p = jnp.zeros((batch_pad, d_in_pad), jnp.float32)
    x_p = x_p.at[:batch, :d_latent].set(x.astype(jnp.float32))

    padded_params = []
    true_dims = []
    prev_pad = d_in_pad
    for (w, b, g, beta) in hidden_params:
        d_in_t, d_out_t = w.shape
        d_out_pad = _round_up(d_out_t, _LANE)
        w_p = jnp.zeros((prev_pad, d_out_pad), jnp.float32).at[:d_in_t, :d_out_t].set(w)
        b_p = jnp.zeros((1, d_out_pad), jnp.float32).at[:, :d_out_t].set(b)
        g_p = jnp.zeros((1, d_out_pad), jnp.float32).at[:, :d_out_t].set(g)
        beta_p = jnp.zeros((1, d_out_pad), jnp.float32).at[:, :d_out_t].set(beta)
        padded_params.extend([w_p, b_p, g_p, beta_p])
        true_dims.append(d_out_t)
        prev_pad = d_out_pad

    w_out, b_out = out_params
    d_out_pad = _round_up(out_features, _LANE)
    w_out_p = jnp.zeros((prev_pad, d_out_pad), jnp.float32)
    w_out_p = w_out_p.at[:w_out.shape[0], :out_features].set(w_out)
    b_out_p = jnp.zeros((1, d_out_pad), jnp.float32).at[:, :out_features].set(b_out)

    kernel = functools.partial(
        _fused_decoder_kernel,
        num_hidden=len(hidden_params),
        true_dims=tuple(true_dims),
    )

    # x is tiled over the batch grid axis; all parameters are resident
    # (blocked BlockSpecs place tiles in VMEM by default).
    in_specs = [pl.BlockSpec((tile_b, d_in_pad), lambda i: (i, 0))]
    for prm in padded_params + [w_out_p, b_out_p]:
        in_specs.append(pl.BlockSpec(prm.shape, lambda i: (0, 0)))

    out = pl.pallas_call(
        kernel,
        out_shape=jax.ShapeDtypeStruct((batch_pad, d_out_pad), jnp.float32),
        grid=(batch_pad // tile_b,),
        in_specs=in_specs,
        out_specs=pl.BlockSpec((tile_b, d_out_pad), lambda i: (i, 0)),
        compiler_params=pltpu.CompilerParams(
            dimension_semantics=("parallel",),       # megacore / v7x 2-TC sharding
            vmem_limit_bytes=32 * 1024 * 1024,       # safe on v5e/v6e/v7x; budget vs 64 MiB on v7x
        ),
    )(x_p, *padded_params, w_out_p, b_out_p)

    out = out[:batch, :out_features]
    return out.reshape(batch, *output_shape)


def init_dense_decoder_params(key, latent_space_dim, hidden_layers, output_shape):
    """PyTorch-style init: Linear ~ U(+-1/sqrt(fan_in)); LayerNorm gamma=1, beta=0."""
    hidden_layers = tuple(hidden_layers) if hidden_layers else ()
    hidden_params = []
    in_features = latent_space_dim
    for layer_size in hidden_layers:
        key, kw, kb = jax.random.split(key, 3)
        bound = 1.0 / float(in_features) ** 0.5
        w = jax.random.uniform(kw, (in_features, layer_size), jnp.float32, -bound, bound)
        b = jax.random.uniform(kb, (1, layer_size), jnp.float32, -bound, bound)
        gamma = jnp.ones((1, layer_size), jnp.float32)
        beta = jnp.zeros((1, layer_size), jnp.float32)
        hidden_params.append((w, b, gamma, beta))
        in_features = layer_size

    out_features = output_shape[0] * output_shape[1] * output_shape[2]
    key, kw, kb = jax.random.split(key, 3)
    bound = 1.0 / float(in_features) ** 0.5
    w_out = jax.random.uniform(kw, (in_features, out_features), jnp.float32, -bound, bound)
    b_out = jax.random.uniform(kb, (1, out_features), jnp.float32, -bound, bound)
    return hidden_params, (w_out, b_out)


def _reference_forward(x, hidden_params, out_params, output_shape):
    """Pure-JAX f32 reference matching PyTorch eval-mode semantics."""
    h = x.astype(jnp.float32)
    for (w, b, g, beta) in hidden_params:
        y = h @ w + b
        y = jnp.maximum(y, 0.0)
        mean = jnp.mean(y, axis=-1, keepdims=True)
        var = jnp.mean((y - mean) ** 2, axis=-1, keepdims=True)
        h = (y - mean) / jnp.sqrt(var + _LN_EPS) * g + beta
    w_out, b_out = out_params
    z = h @ w_out + b_out
    return jax.nn.sigmoid(z).reshape(x.shape[0], *output_shape)


if __name__ == "__main__":
    key = jax.random.PRNGKey(0)
    k_x, k_p = jax.random.split(key)

    batch = 8
    latent_space_dim = 2
    hidden_layers = (64, 32)
    output_shape = (1, 16, 16)   # C, H, W -> 256 output features

    x = jax.random.normal(k_x, (batch, latent_space_dim), jnp.float32)
    hidden_params, out_params = init_dense_decoder_params(
        k_p, latent_space_dim, hidden_layers, output_shape)

    out = dense_decoder_forward(x, hidden_params, out_params, output_shape)
    out = jax.block_until_ready(out)

    ref = _reference_forward(x, hidden_params, out_params, output_shape)
    assert out.shape == (batch, *output_shape)
    max_err = float(jnp.max(jnp.abs(out - ref)))
    # bf16 MXU operands vs f32 reference -> loose tolerance (sigmoid output in [0,1]).
    assert max_err < 5e-2, f"mismatch vs reference (max abs err {max_err})"

    print("KERNEL_OK")
</pallas_src>

<mosaic_0001>
module attributes {stable_mosaic.version = 11 : i64} {
  func.func @_fused_decoder_kernel(%arg0: i32, %arg1: memref<8x128xf32, #tpu.memory_space<vmem>>, %arg2: memref<128x128xf32, #tpu.memory_space<vmem>>, %arg3: memref<1x128xf32, #tpu.memory_space<vmem>>, %arg4: memref<1x128xf32, #tpu.memory_space<vmem>>, %arg5: memref<1x128xf32, #tpu.memory_space<vmem>>, %arg6: memref<128x128xf32, #tpu.memory_space<vmem>>, %arg7: memref<1x128xf32, #tpu.memory_space<vmem>>, %arg8: memref<1x128xf32, #tpu.memory_space<vmem>>, %arg9: memref<1x128xf32, #tpu.memory_space<vmem>>, %arg10: memref<128x256xf32, #tpu.memory_space<vmem>>, %arg11: memref<1x256xf32, #tpu.memory_space<vmem>>, %arg12: memref<8x256xf32, #tpu.memory_space<vmem>>) attributes {dimension_semantics = [#tpu.dimension_semantics<parallel>], iteration_bounds = array<i64: 1>, scalar_prefetch = 0 : i64, scratch_operands = 0 : i64, tpu.core_type = #tpu.core_type<tc>, window_params = [{transform_indices = @transform_0, window_bounds = array<i64: 8, 128>}, {pipeline_mode = #tpu.pipeline_mode<synchronous>, transform_indices = @transform_1, window_bounds = array<i64: 128, 128>}, {pipeline_mode = #tpu.pipeline_mode<synchronous>, transform_indices = @transform_2, window_bounds = array<i64: 1, 128>}, {pipeline_mode = #tpu.pipeline_mode<synchronous>, transform_indices = @transform_3, window_bounds = array<i64: 1, 128>}, {pipeline_mode = #tpu.pipeline_mode<synchronous>, transform_indices = @transform_4, window_bounds = array<i64: 1, 128>}, {pipeline_mode = #tpu.pipeline_mode<synchronous>, transform_indices = @transform_5, window_bounds = array<i64: 128, 128>}, {pipeline_mode = #tpu.pipeline_mode<synchronous>, transform_indices = @transform_6, window_bounds = array<i64: 1, 128>}, {pipeline_mode = #tpu.pipeline_mode<synchronous>, transform_indices = @transform_7, window_bounds = array<i64: 1, 128>}, {pipeline_mode = #tpu.pipeline_mode<synchronous>, transform_indices = @transform_8, window_bounds = array<i64: 1, 128>}, {pipeline_mode = #tpu.pipeline_mode<synchronous>, transform_indices = @transform_9, window_bounds = array<i64: 128, 256>}, {pipeline_mode = #tpu.pipeline_mode<synchronous>, transform_indices = @transform_10, window_bounds = array<i64: 1, 256>}, {transform_indices = @transform_11, window_bounds = array<i64: 8, 256>}]} {
    %c0 = arith.constant 0 : index
    %c0_0 = arith.constant 0 : index
    %0 = vector.load %arg1[%c0, %c0_0] : memref<8x128xf32, #tpu.memory_space<vmem>>, vector<8x128xf32>
    %1 = arith.truncf %0 : vector<8x128xf32> to vector<8x128xbf16>
    %c0_1 = arith.constant 0 : index
    %c0_2 = arith.constant 0 : index
    %2 = vector.load %arg2[%c0_1, %c0_2] : memref<128x128xf32, #tpu.memory_space<vmem>>, vector<128x128xf32>
    %3 = arith.truncf %2 : vector<128x128xf32> to vector<128x128xbf16>
    %cst = arith.constant dense<0.000000e+00> : vector<8x128xf32>
    %4 = tpu.matmul %1, %3, %cst {dimension_numbers = #tpu.dot_dimension_numbers<[1], [0], [0], [1], [0, 0, 1, 1], [], []>} : vector<8x128xbf16>, vector<128x128xbf16>, vector<8x128xf32> -> vector<8x128xf32>
    %c0_3 = arith.constant 0 : index
    %c0_4 = arith.constant 0 : index
    %5 = vector.load %arg3[%c0_3, %c0_4] : memref<1x128xf32, #tpu.memory_space<vmem>>, vector<1x128xf32>
    %6 = vector.broadcast %5 : vector<1x128xf32> to vector<8x128xf32>
    %7 = arith.addf %4, %6 : vector<8x128xf32>
    %cst_5 = arith.constant 0.000000e+00 : f32
    %8 = vector.broadcast %cst_5 : f32 to vector<8x128xf32>
    %9 = arith.maximumf %7, %8 : vector<8x128xf32>
    %cst_6 = arith.constant dense<0.000000e+00> : vector<8xf32>
    %10 = vector.multi_reduction <add>, %9, %cst_6 [1] : vector<8x128xf32> to vector<8xf32>
    %11 = vector.shape_cast %10 : vector<8xf32> to vector<8x1xf32>
    %12 = arith.mulf %9, %9 : vector<8x128xf32>
    %cst_7 = arith.constant dense<0.000000e+00> : vector<8xf32>
    %13 = vector.multi_reduction <add>, %12, %cst_7 [1] : vector<8x128xf32> to vector<8xf32>
    %14 = vector.shape_cast %13 : vector<8xf32> to vector<8x1xf32>
    %cst_8 = arith.constant 1.562500e-02 : f32
    %15 = vector.broadcast %cst_8 : f32 to vector<8x1xf32>
    %16 = arith.mulf %11, %15 : vector<8x1xf32>
    %cst_9 = arith.constant 1.562500e-02 : f32
    %17 = vector.broadcast %cst_9 : f32 to vector<8x1xf32>
    %18 = arith.mulf %14, %17 : vector<8x1xf32>
    %19 = arith.mulf %16, %16 : vector<8x1xf32>
    %20 = arith.subf %18, %19 : vector<8x1xf32>
    %cst_10 = arith.constant 9.99999974E-6 : f32
    %21 = vector.broadcast %cst_10 : f32 to vector<8x1xf32>
    %22 = arith.addf %20, %21 : vector<8x1xf32>
    %23 = math.rsqrt %22 : vector<8x1xf32>
    %24 = vector.broadcast %16 : vector<8x1xf32> to vector<8x128xf32>
    %25 = arith.subf %9, %24 : vector<8x128xf32>
    %26 = vector.broadcast %23 : vector<8x1xf32> to vector<8x128xf32>
    %27 = arith.mulf %25, %26 : vector<8x128xf32>
    %c0_11 = arith.constant 0 : index
    %c0_12 = arith.constant 0 : index
    %28 = vector.load %arg4[%c0_11, %c0_12] : memref<1x128xf32, #tpu.memory_space<vmem>>, vector<1x128xf32>
    %29 = vector.broadcast %28 : vector<1x128xf32> to vector<8x128xf32>
    %30 = arith.mulf %27, %29 : vector<8x128xf32>
    %c0_13 = arith.constant 0 : index
    %c0_14 = arith.constant 0 : index
    %31 = vector.load %arg5[%c0_13, %c0_14] : memref<1x128xf32, #tpu.memory_space<vmem>>, vector<1x128xf32>
    %32 = vector.broadcast %31 : vector<1x128xf32> to vector<8x128xf32>
    %33 = arith.addf %30, %32 : vector<8x128xf32>
    %34 = arith.truncf %33 : vector<8x128xf32> to vector<8x128xbf16>
    %c0_15 = arith.constant 0 : index
    %c0_16 = arith.constant 0 : index
    %35 = vector.load %arg6[%c0_15, %c0_16] : memref<128x128xf32, #tpu.memory_space<vmem>>, vector<128x128xf32>
    %36 = arith.truncf %35 : vector<128x128xf32> to vector<128x128xbf16>
    %cst_17 = arith.constant dense<0.000000e+00> : vector<8x128xf32>
    %37 = tpu.matmul %34, %36, %cst_17 {dimension_numbers = #tpu.dot_dimension_numbers<[1], [0], [0], [1], [0, 0, 1, 1], [], []>} : vector<8x128xbf16>, vector<128x128xbf16>, vector<8x128xf32> -> vector<8x128xf32>
    %c0_18 = arith.constant 0 : index
    %c0_19 = arith.constant 0 : index
    %38 = vector.load %arg7[%c0_18, %c0_19] : memref<1x128xf32, #tpu.memory_space<vmem>>, vector<1x128xf32>
    %39 = vector.broadcast %38 : vector<1x128xf32> to vector<8x128xf32>
    %40 = arith.addf %37, %39 : vector<8x128xf32>
    %cst_20 = arith.constant 0.000000e+00 : f32
    %41 = vector.broadcast %cst_20 : f32 to vector<8x128xf32>
    %42 = arith.maximumf %40, %41 : vector<8x128xf32>
    %cst_21 = arith.constant dense<0.000000e+00> : vector<8xf32>
    %43 = vector.multi_reduction <add>, %42, %cst_21 [1] : vector<8x128xf32> to vector<8xf32>
    %44 = vector.shape_cast %43 : vector<8xf32> to vector<8x1xf32>
    %45 = arith.mulf %42, %42 : vector<8x128xf32>
    %cst_22 = arith.constant dense<0.000000e+00> : vector<8xf32>
    %46 = vector.multi_reduction <add>, %45, %cst_22 [1] : vector<8x128xf32> to vector<8xf32>
    %47 = vector.shape_cast %46 : vector<8xf32> to vector<8x1xf32>
    %cst_23 = arith.constant 3.125000e-02 : f32
    %48 = vector.broadcast %cst_23 : f32 to vector<8x1xf32>
    %49 = arith.mulf %44, %48 : vector<8x1xf32>
    %cst_24 = arith.constant 3.125000e-02 : f32
    %50 = vector.broadcast %cst_24 : f32 to vector<8x1xf32>
    %51 = arith.mulf %47, %50 : vector<8x1xf32>
    %52 = arith.mulf %49, %49 : vector<8x1xf32>
    %53 = arith.subf %51, %52 : vector<8x1xf32>
    %cst_25 = arith.constant 9.99999974E-6 : f32
    %54 = vector.broadcast %cst_25 : f32 to vector<8x1xf32>
    %55 = arith.addf %53, %54 : vector<8x1xf32>
    %56 = math.rsqrt %55 : vector<8x1xf32>
    %57 = vector.broadcast %49 : vector<8x1xf32> to vector<8x128xf32>
    %58 = arith.subf %42, %57 : vector<8x128xf32>
    %59 = vector.broadcast %56 : vector<8x1xf32> to vector<8x128xf32>
    %60 = arith.mulf %58, %59 : vector<8x128xf32>
    %c0_26 = arith.constant 0 : index
    %c0_27 = arith.constant 0 : index
    %61 = vector.load %arg8[%c0_26, %c0_27] : memref<1x128xf32, #tpu.memory_space<vmem>>, vector<1x128xf32>
    %62 = vector.broadcast %61 : vector<1x128xf32> to vector<8x128xf32>
    %63 = arith.mulf %60, %62 : vector<8x128xf32>
    %c0_28 = arith.constant 0 : index
    %c0_29 = arith.constant 0 : index
    %64 = vector.load %arg9[%c0_28, %c0_29] : memref<1x128xf32, #tpu.memory_space<vmem>>, vector<1x128xf32>
    %65 = vector.broadcast %64 : vector<1x128xf32> to vector<8x128xf32>
    %66 = arith.addf %63, %65 : vector<8x128xf32>
    %67 = arith.truncf %66 : vector<8x128xf32> to vector<8x128xbf16>
    %c0_30 = arith.constant 0 : index
    %c0_31 = arith.constant 0 : index
    %68 = vector.load %arg10[%c0_30, %c0_31] : memref<128x256xf32, #tpu.memory_space<vmem>>, vector<128x256xf32>
    %69 = arith.truncf %68 : vector<128x256xf32> to vector<128x256xbf16>
    %cst_32 = arith.constant dense<0.000000e+00> : vector<8x256xf32>
    %70 = tpu.matmul %67, %69, %cst_32 {dimension_numbers = #tpu.dot_dimension_numbers<[1], [0], [0], [1], [0, 0, 1, 1], [], []>} : vector<8x128xbf16>, vector<128x256xbf16>, vector<8x256xf32> -> vector<8x256xf32>
    %c0_33 = arith.constant 0 : index
    %c0_34 = arith.constant 0 : index
    %71 = vector.load %arg11[%c0_33, %c0_34] : memref<1x256xf32, #tpu.memory_space<vmem>>, vector<1x256xf32>
    %72 = vector.broadcast %71 : vector<1x256xf32> to vector<8x256xf32>
    %73 = arith.addf %70, %72 : vector<8x256xf32>
    %74 = arith.negf %73 : vector<8x256xf32>
    %75 = math.exp %74 : vector<8x256xf32>
    %cst_35 = arith.constant 1.000000e+00 : f32
    %76 = vector.broadcast %cst_35 : f32 to vector<8x256xf32>
    %77 = arith.addf %76, %75 : vector<8x256xf32>
    %78 = arith.divf %76, %77 : vector<8x256xf32>
    %c0_36 = arith.constant 0 : index
    %c0_37 = arith.constant 0 : index
    %79 = vector.load %arg12[%c0_36, %c0_37] : memref<8x256xf32, #tpu.memory_space<vmem>>, vector<8x256xf32>
    tpu.vector_store %arg12[%c0_36, %c0_37], %78 {strides = array<i32>} : memref<8x256xf32, #tpu.memory_space<vmem>>, vector<8x256xf32>,
    return
  }
  func.func @transform_0(%arg0: i32) -> (i32, i32) {
    %c0_i32 = arith.constant 0 : i32
    %c0_i32_0 = arith.constant 0 : i32
    return %arg0, %c0_i32 : i32, i32
  }
  func.func @transform_1(%arg0: i32) -> (i32, i32) {
    %c0_i32 = arith.constant 0 : i32
    %c0_i32_0 = arith.constant 0 : i32
    %c0_i32_1 = arith.constant 0 : i32
    return %c0_i32, %c0_i32_0 : i32, i32
  }
  func.func @transform_2(%arg0: i32) -> (i32, i32) {
    %c0_i32 = arith.constant 0 : i32
    %c0_i32_0 = arith.constant 0 : i32
    %c0_i32_1 = arith.constant 0 : i32
    return %c0_i32, %c0_i32_0 : i32, i32
  }
  func.func @transform_3(%arg0: i32) -> (i32, i32) {
    %c0_i32 = arith.constant 0 : i32
    %c0_i32_0 = arith.constant 0 : i32
    %c0_i32_1 = arith.constant 0 : i32
    return %c0_i32, %c0_i32_0 : i32, i32
  }
  func.func @transform_4(%arg0: i32) -> (i32, i32) {
    %c0_i32 = arith.constant 0 : i32
    %c0_i32_0 = arith.constant 0 : i32
    %c0_i32_1 = arith.constant 0 : i32
    return %c0_i32, %c0_i32_0 : i32, i32
  }
  func.func @transform_5(%arg0: i32) -> (i32, i32) {
    %c0_i32 = arith.constant 0 : i32
    %c0_i32_0 = arith.constant 0 : i32
    %c0_i32_1 = arith.constant 0 : i32
    return %c0_i32, %c0_i32_0 : i32, i32
  }
  func.func @transform_6(%arg0: i32) -> (i32, i32) {
    %c0_i32 = arith.constant 0 : i32
    %c0_i32_0 = arith.constant 0 : i32
    %c0_i32_1 = arith.constant 0 : i32
    return %c0_i32, %c0_i32_0 : i32, i32
  }
  func.func @transform_7(%arg0: i32) -> (i32, i32) {
    %c0_i32 = arith.constant 0 : i32
    %c0_i32_0 = arith.constant 0 : i32
    %c0_i32_1 = arith.constant 0 : i32
    return %c0_i32, %c0_i32_0 : i32, i32
  }
  func.func @transform_8(%arg0: i32) -> (i32, i32) {
    %c0_i32 = arith.constant 0 : i32
    %c0_i32_0 = arith.constant 0 : i32
    %c0_i32_1 = arith.constant 0 : i32
    return %c0_i32, %c0_i32_0 : i32, i32
  }
  func.func @transform_9(%arg0: i32) -> (i32, i32) {
    %c0_i32 = arith.constant 0 : i32
    %c0_i32_0 = arith.constant 0 : i32
    %c0_i32_1 = arith.constant 0 : i32
    return %c0_i32, %c0_i32_0 : i32, i32
  }
  func.func @transform_10(%arg0: i32) -> (i32, i32) {
    %c0_i32 = arith.constant 0 : i32
    %c0_i32_0 = arith.constant 0 : i32
    %c0_i32_1 = arith.constant 0 : i32
    return %c0_i32, %c0_i32_0 : i32, i32
  }
  func.func @transform_11(%arg0: i32) -> (i32, i32) {
    %c0_i32 = arith.constant 0 : i32
    %c0_i32_0 = arith.constant 0 : i32
    return %arg0, %c0_i32 : i32, i32
  }
}

</mosaic_0001>

<bundles_post_ra>
// kernel: dense_decoder_forward.1
= control target key start
LH: loop header
LB: loop body
LE: loop exit
PB: predicated region body
PF: predicated region fallthrough
CT: control target
= control target key end

     0   :  { %s622_s1 = inlined_call_operand.vmem [shape: f32[128,128], index: 1, kind: input, shape index: {}]   ;;  %s623_s2 = inlined_call_operand.vmem [shape: f32[1,128], index: 2, kind: input, shape index: {}]   ;;  %s624_s0 = inlined_call_operand.vmem [shape: f32[8,128], index: 0, kind: input, shape index: {}]   ;;  %s625_s3 = inlined_call_operand.vmem [shape: f32[1,128], index: 3, kind: input, shape index: {}]   ;;  %s626_s4 = inlined_call_operand.vmem [shape: f32[1,128], index: 4, kind: input, shape index: {}]   ;;  %s627_s6 = inlined_call_operand.vmem [shape: f32[1,128], index: 6, kind: input, shape index: {}]   ;;  %s628_s5 = inlined_call_operand.vmem [shape: f32[128,128], index: 5, kind: input, shape index: {}]   ;;  %s629_s7 = inlined_call_operand.vmem [shape: f32[1,128], index: 7, kind: input, shape index: {}]   ;;  %s630_s8 = inlined_call_operand.vmem [shape: f32[1,128], index: 8, kind: input, shape index: {}]   ;;  %s631_s9 = inlined_call_operand.vmem [shape: f32[128,256], index: 9, kind: input, shape index: {}]   ;;  %s632_s10 = inlined_call_operand.vmem [shape: f32[1,256], index: 10, kind: input, shape index: {}]   ;;  %s633_s11 = inlined_call_operand.vmem [shape: f32[8,256], index: 11, kind: output, shape index: {}]  }
   0x1   :  { %v54_v0 = vld [vmem:[%s622_s1 + $0x70] sm:$0xff]  ;;  %v55_v1 = vld [vmem:[%s622_s1 + $0x78] sm:$0xff]  ;;  %v52_v2 = vld [vmem:[%s622_s1 + $0x60] sm:$0xff] }
   0x2   :  { %v63_v3 = vpack.c.bf16 %v55_v1, %v54_v0  ;;  %v53_v4 = vld [vmem:[%s622_s1 + $0x68] sm:$0xff]  ;;  %v50_v6 = vld [vmem:[%s622_s1 + $0x50] sm:$0xff]  ;;  %v51_v7 = vld [vmem:[%s622_s1 + $0x58] sm:$0xff] }
   0x3   :  { %v62_v5 = vpack.c.bf16 %v53_v4, %v52_v2  ;;  %v61_v8 = vpack.c.bf16 %v51_v7, %v50_v6  ;;  %v48_v9 = vld [vmem:[%s622_s1 + $0x40] sm:$0xff]  ;;  %v49_v10 = vld [vmem:[%s622_s1 + $0x48] sm:$0xff]  ;;  %v46_v12 = vld [vmem:[%s622_s1 + $0x30] sm:$0xff] }
   0x4   :  { %68 = vmatpush.bf16.msra.mxu0 %v63_v3  ;;  %v60_v11 = vpack.c.bf16 %v49_v10, %v48_v9  ;;  %v47_v13 = vld [vmem:[%s622_s1 + $0x38] sm:$0xff]  ;;  %v44_v15 = vld [vmem:[%s622_s1 + $0x20] sm:$0xff]  ;;  %v45_v16 = vld [vmem:[%s622_s1 + $0x28] sm:$0xff] }
   0x5   :  { %v59_v14 = vpack.c.bf16 %v47_v13, %v46_v12  ;;  %v58_v17 = vpack.c.bf16 %v45_v16, %v44_v15  ;;  %v42_v18 = vld [vmem:[%s622_s1 + $0x10] sm:$0xff]  ;;  %v43_v19 = vld [vmem:[%s622_s1 + $0x18] sm:$0xff]  ;;  %v40_v21 = vld [vmem:[%s622_s1] sm:$0xff] }
   0x6   :  { %v57_v20 = vpack.c.bf16 %v43_v19, %v42_v18  ;;  %v41_v22 = vld [vmem:[%s622_s1 + $0x8] sm:$0xff]  ;;  %v38_v24 = vld [vmem:[%s624_s0] sm:$0xff]  ;;  %v129_v32 = vld [vmem:[%s628_s5 + $0x70] sm:$0xff] }
   0x7   :  { %v56_v23 = vpack.c.bf16 %v41_v22, %v40_v21  ;;  %v39_v25 = vpack.c.bf16 %v38_v24, %v38_v24  ;;  %v316_v26 = vld [vmem:[%s623_s2] ss:$0 sm:$0xff]  ;;  %v130_v33 = vld [vmem:[%s628_s5 + $0x78] sm:$0xff]  ;;  %v128_v36 = vld [vmem:[%s628_s5 + $0x68] sm:$0xff] }
   0x8   :  { %69 = vmatpush.bf16.msra.mxu0 %v62_v5  ;;  %v138_v34 = vpack.c.bf16 %v130_v33, %v129_v32  ;;  %v127_v35 = vld [vmem:[%s628_s5 + $0x60] sm:$0xff]  ;;  %v125_v38 = vld [vmem:[%s628_s5 + $0x50] sm:$0xff]  ;;  %v126_v39 = vld [vmem:[%s628_s5 + $0x58] sm:$0xff] }
   0x9   :  { %v137_v37 = vpack.c.bf16 %v128_v36, %v127_v35  ;;  %v136_v40 = vpack.c.bf16 %v126_v39, %v125_v38  ;;  %v123_v41 = vld [vmem:[%s628_s5 + $0x40] sm:$0xff]  ;;  %v124_v42 = vld [vmem:[%s628_s5 + $0x48] sm:$0xff]  ;;  %v121_v44 = vld [vmem:[%s628_s5 + $0x30] sm:$0xff] }
   0xa   :  { %143 = vmatpush.bf16.msra.mxu1 %v138_v34  ;;  %v135_v43 = vpack.c.bf16 %v124_v42, %v123_v41  ;;  %v122_v45 = vld [vmem:[%s628_s5 + $0x38] sm:$0xff]  ;;  %v119_v47 = vld [vmem:[%s628_s5 + $0x20] sm:$0xff]  ;;  %v120_v48 = vld [vmem:[%s628_s5 + $0x28] sm:$0xff] }
   0xb   :  { %v134_v46 = vpack.c.bf16 %v122_v45, %v121_v44  ;;  %v133_v49 = vpack.c.bf16 %v120_v48, %v119_v47  ;;  %v117_v50 = vld [vmem:[%s628_s5 + $0x10] sm:$0xff]  ;;  %v118_v51 = vld [vmem:[%s628_s5 + $0x18] sm:$0xff]  ;;  %v115_v53 = vld [vmem:[%s628_s5] sm:$0xff] }
   0xc   :  { %70 = vmatpush.bf16.msra.mxu0 %v61_v8  ;;  %v132_v52 = vpack.c.bf16 %v118_v51, %v117_v50  ;;  %v116_v54 = vld [vmem:[%s628_s5 + $0x8] sm:$0xff]  ;;  %v317_v6 = vld [vmem:[%s625_s3] ss:$0 sm:$0xff]  ;;  %v212_v32 = vld [vmem:[%s631_s9 + $0xb0] sm:$0xff] }
   0xd   :  { %v131_v56 = vpack.c.bf16 %v116_v54, %v115_v53  ;;  %v318_v9 = vld [vmem:[%s626_s4] ss:$0 sm:$0xff]  ;;  %v219_v21 = vld [vmem:[%s631_s9 + $0xe8] sm:$0xff]  ;;  %v213_v35 = vld [vmem:[%s631_s9 + $0xb8] sm:$0xff] }
   0xe   :  { %144 = vmatpush.bf16.msra.mxu1 %v137_v37  ;;  %v319_v13 = vld [vmem:[%s627_s6] ss:$0 sm:$0xff]  ;;  %v211_v33 = vld [vmem:[%s631_s9 + $0xa8] sm:$0xff]  ;;  %v208_v38 = vld [vmem:[%s631_s9 + $0x90] sm:$0xff] }
   0xf   :  { %v218_v19 = vld [vmem:[%s631_s9 + $0xe0] sm:$0xff]  ;;  %v233_v36 = vpack.c.bf16 %v213_v35, %v211_v33  ;;  %v207_v39 = vld [vmem:[%s631_s9 + $0x88] sm:$0xff]  ;;  %v209_v41 = vld [vmem:[%s631_s9 + $0x98] sm:$0xff] }
  0x10   :  { %71 = vmatpush.bf16.msra.mxu0 %v60_v11  ;;  %v206_v37 = vld [vmem:[%s631_s9 + $0x80] sm:$0xff]  ;;  %v231_v42 = vpack.c.bf16 %v209_v41, %v207_v39  ;;  %v204_v44 = vld [vmem:[%s631_s9 + $0x70] sm:$0xff]  ;;  %v203_v45 = vld [vmem:[%s631_s9 + $0x68] sm:$0xff] }
  0x11   :  { %v205_v47 = vld [vmem:[%s631_s9 + $0x78] sm:$0xff]  ;;  %v200_v50 = vld [vmem:[%s631_s9 + $0x50] sm:$0xff]  ;;  %v199_v51 = vld [vmem:[%s631_s9 + $0x48] sm:$0xff] }
  0x12   :  { %145 = vmatpush.bf16.msra.mxu1 %v136_v40  ;;  %v230_v40 = vpack.c.bf16 %v208_v38, %v206_v37  ;;  %v229_v48 = vpack.c.bf16 %v205_v47, %v203_v45  ;;  %v201_v53 = vld [vmem:[%s631_s9 + $0x58] sm:$0xff]  ;;  %v194_v54 = vld [vmem:[%s631_s9 + $0x20] sm:$0xff] }
  0x14   :  { %72 = vmatpush.bf16.msra.mxu0 %v59_v14 }
  0x16   :  { %146 = vmatpush.bf16.msra.mxu1 %v135_v43  ;;  %v202_v43 = vld [vmem:[%s631_s9 + $0x60] sm:$0xff] }
  0x18   :  { %73 = vmatpush.bf16.msra.mxu0 %v58_v17 }
  0x1a   :  { %147 = vmatpush.bf16.msra.mxu1 %v134_v46  ;;  %v228_v46 = vpack.c.bf16 %v204_v44, %v202_v43 }
  0x1c   :  { %74 = vmatpush.bf16.msra.mxu0 %v57_v20  ;;  %v220_v20 = vld [vmem:[%s631_s9 + $0xf0] sm:$0xff] }
  0x1d   :  { %v236_v22 = vpack.c.bf16 %v220_v20, %v218_v19 }
  0x1e   :  { %148 = vmatpush.bf16.msra.mxu1 %v133_v49  ;;  %v198_v49 = vld [vmem:[%s631_s9 + $0x40] sm:$0xff] }
  0x1f   :  { %244 = vmatpush.bf16.msra.mxu2 %v236_v22 }
  0x20   :  { %75 = vmatpush.bf16.msra.mxu0 %v56_v23  ;;  %v221_v23 = vld [vmem:[%s631_s9 + $0xf8] sm:$0xff] }
  0x21   :  { %v237_v24 = vpack.c.bf16 %v221_v23, %v219_v21  ;;  %v321_v21 = vld [vmem:[%s630_s8] ss:$0 sm:$0xff] }
  0x22   :  { %149 = vmatpush.bf16.msra.mxu1 %v132_v52  ;;  %v226_v52 = vpack.c.bf16 %v200_v50, %v198_v49 }
  0x23   :  { %76 = vmatmul.bf16.vlgmr.msra.gmra.mxu0 %v39_v25  ;;  %257 = vmatpush.bf16.msra.mxu3 %v237_v24  ;;  %v214_v25 = vld [vmem:[%s631_s9 + $0xc0] sm:$0xff] }
  0x26   :  { %150 = vmatpush.bf16.msra.mxu1 %v131_v56  ;;  %v227_v56 = vpack.c.bf16 %v201_v53, %v199_v51 }
  0xa0   :  { %v77_v27 = vpop.f32.mrf.mxu0 }
  0xa1   :  { %v78_v28 = vadd.f32 %v316_v26, %v77_v27  ;;  %v216_v26 = vld [vmem:[%s631_s9 + $0xd0] sm:$0xff]  ;;  %v215_v27 = vld [vmem:[%s631_s9 + $0xc8] sm:$0xff] }
  0xa3   :  { %v81_v29 = vmax.f32 %v78_v28, 0.0  ;;  %v234_v28 = vpack.c.bf16 %v216_v26, %v214_v25 }
  0xa5   :  { %82 = vadd.xlane.f32.xlu0 %v81_v29  ;;  %v84_v31 = vmul.f32 %v81_v29, %v81_v29  ;;  %245 = vmatpush.bf16.msra.mxu2 %v234_v28 }
  0xa8   :  { %v79_v30 = vpop.f32.mrf.mxu0 }
  0xad   :  { %85 = vadd.xlane.f32.xlu0 %v84_v31  ;;  %v210_v31 = vld [vmem:[%s631_s9 + $0xa0] sm:$0xff] }
  0xae   :  { %v232_v34 = vpack.c.bf16 %v212_v32, %v210_v31 }
  0xb0   :  { %246 = vmatpush.bf16.msra.mxu2 %v232_v34 }
  0xb4   :  { %247 = vmatpush.bf16.msra.mxu2 %v230_v40 }
  0xb8   :  { %248 = vmatpush.bf16.msra.mxu2 %v228_v46 }
  0xbc   :  { %249 = vmatpush.bf16.msra.mxu2 %v226_v52 }
 0x118   :  { %v83_v55 = vpop.xlane.xlu0 %82 }
 0x119   :  { %v87_v57 = vmul.f32 0.015625, %v83_v55  ;;  %v196_v55 = vld [vmem:[%s631_s9 + $0x30] sm:$0xff] }
 0x11b   :  { %v89_v59 = vmul.f32 %v87_v57, %v87_v57  ;;  %v102_v5 = vsub.f32 %v81_v29, %v87_v57  ;;  %v217_v29 = vld [vmem:[%s631_s9 + $0xd8] sm:$0xff]  ;;  %v195_v57 = vld [vmem:[%s631_s9 + $0x28] sm:$0xff] }
 0x11c   :  { %v235_v30 = vpack.c.bf16 %v217_v29, %v215_v27 }
 0x11e   :  { %258 = vmatpush.bf16.msra.mxu3 %v235_v30 }
 0x120   :  { %v86_v58 = vpop.xlane.xlu0 %85 }
 0x121   :  { %v88_v60 = vmul.f32 0.015625, %v86_v58  ;;  %v197_v58 = vld [vmem:[%s631_s9 + $0x38] sm:$0xff] }
 0x122   :  { %259 = vmatpush.bf16.msra.mxu3 %v233_v36 }
 0x123   :  { %v90_v61 = vsub.f32 %v88_v60, %v89_v59  ;;  %v224_v59 = vpack.c.bf16 %v196_v55, %v194_v54  ;;  %v225_v60 = vpack.c.bf16 %v197_v58, %v195_v57 }
 0x125   :  { %v91_v62 = vadd.f32 1e-05, %v90_v61  ;;  %v190_v61 = vld [vmem:[%s631_s9] sm:$0xff]  ;;  %250 = vmatpush.bf16.msra.mxu2 %v224_v59 }
 0x126   :  { %260 = vmatpush.bf16.msra.mxu3 %v231_v42 }
 0x127   :  { %322 = vrsqrt.f32 %v91_v62  ;;  %vm98_vm1 = vweird.f32 %v91_v62 }
 0x12a   :  { %261 = vmatpush.bf16.msra.mxu3 %v229_v48 }
 0x12d   :  { %v323_v63 = vpop.eup %322 }
 0x12e   :  { %v93_v0 = vmul.f32 %v323_v63, %v91_v62  ;;  %vm99_vm0 = vweird.f32 %v323_v63  ;;  %262 = vmatpush.bf16.msra.mxu3 %v227_v56  ;;  %v192_v62 = vld [vmem:[%s631_s9 + $0x10] sm:$0xff] }
 0x12f   :  { %vm100_vm2 = vmor %vm98_vm1, %vm99_vm0 }
 0x130   :  { %v94_v1 = vmul.f32 %v323_v63, %v93_v0  ;;  %v191_v0 = vld [vmem:[%s631_s9 + $0x8] sm:$0xff] }
 0x132   :  { %v95_v2 = vmul.f32 0.5, %v94_v1  ;;  %v193_v1 = vld [vmem:[%s631_s9 + $0x18] sm:$0xff]  ;;  %263 = vmatpush.bf16.msra.mxu3 %v225_v60 }
 0x134   :  { %v96_v3 = vsub.f32 1.5, %v95_v2  ;;  %v222_v2 = vpack.c.bf16 %v192_v62, %v190_v61 }
 0x136   :  { %v97_v4 = vmul.f32 %v323_v63, %v96_v3  ;;  %v223_v3 = vpack.c.bf16 %v193_v1, %v191_v0  ;;  %251 = vmatpush.bf16.msra.mxu2 %v222_v2 }
 0x138   :  { %v101_v7 = vsel %vm100_vm2, %v323_v63, %v97_v4  ;;  %264 = vmatpush.bf16.msra.mxu3 %v223_v3 }
 0x139   :  { %v103_v8 = vmul.f32 %v102_v5, %v101_v7 }
 0x13b   :  { %v108_v10 = vmul.f32 %v317_v6, %v103_v8 }
 0x13d   :  { %v113_v11 = vadd.f32 %v318_v9, %v108_v10 }
 0x13f   :  { %v114_v12 = vpack.c.bf16 %v113_v11, %v113_v11 }
 0x141   :  { %151 = vmatmul.bf16.vlgmr.msra.gmra.mxu1 %v114_v12 }
 0x1be   :  { %v152_v14 = vpop.f32.mrf.mxu1 }
 0x1bf   :  { %v153_v15 = vadd.f32 %v319_v13, %v152_v14 }
 0x1c1   :  { %v505_v16 = vmax.f32 %v153_v15, 0.0 }
 0x1c3   :  { %157 = vadd.xlane.f32.xlu1 %v505_v16  ;;  %v159_v18 = vmul.f32 %v505_v16, %v505_v16 }
 0x1c6   :  { %v154_v17 = vpop.f32.mrf.mxu1 }
 0x1cb   :  { %160 = vadd.xlane.f32.xlu1 %v159_v18  ;;  %v320_v18 = vld [vmem:[%s629_s7] ss:$0 sm:$0xff] }
 0x236   :  { %v158_v63 = vpop.xlane.xlu1 %157 }
 0x237   :  { %v162_v4 = vmul.f32 0.03125, %v158_v63 }
 0x239   :  { %v164_v6 = vmul.f32 %v162_v4, %v162_v4  ;;  %v177_v17 = vsub.f32 %v505_v16, %v162_v4  ;;  %v238_v16 = vld [vmem:[%s632_s10] sm:$0x3] }
 0x23a   :  { %v240_v25 = vperm.slane %v238_v16, 0  ;;  %v241_v26 = vperm.slane %v238_v16, 1 }
 0x23e   :  { %v161_v5 = vpop.xlane.xlu1 %160 }
 0x23f   :  { %v163_v7 = vmul.f32 0.03125, %v161_v5 }
 0x241   :  { %v165_v8 = vsub.f32 %v163_v7, %v164_v6 }
 0x243   :  { %v166_v9 = vadd.f32 1e-05, %v165_v8 }
 0x245   :  { %324 = vrsqrt.f32 %v166_v9  ;;  %vm173_vm4 = vweird.f32 %v166_v9 }
 0x24b   :  { %v325_v10 = vpop.eup %324 }
 0x24c   :  { %v168_v11 = vmul.f32 %v325_v10, %v166_v9  ;;  %vm174_vm3 = vweird.f32 %v325_v10 }
 0x24d   :  { %vm175_vm5 = vmor %vm173_vm4, %vm174_vm3 }
 0x24e   :  { %v169_v12 = vmul.f32 %v325_v10, %v168_v11 }
 0x250   :  { %v170_v13 = vmul.f32 0.5, %v169_v12 }
 0x252   :  { %v171_v14 = vsub.f32 1.5, %v170_v13 }
 0x254   :  { %v172_v15 = vmul.f32 %v325_v10, %v171_v14 }
 0x256   :  { %v176_v19 = vsel %vm175_vm5, %v325_v10, %v172_v15 }
 0x257   :  { %v178_v20 = vmul.f32 %v177_v17, %v176_v19 }
 0x259   :  { %v183_v22 = vmul.f32 %v320_v18, %v178_v20 }
 0x25b   :  { %v188_v23 = vadd.f32 %v321_v21, %v183_v22 }
 0x25d   :  { %v189_v24 = vpack.c.bf16 %v188_v23, %v188_v23 }
 0x25f   :  { %252 = vmatmul.bf16.vlgmr.msra.gmra.mxu2 %v189_v24  ;;  %265 = vmatmul.bf16.vlgmr.msra.gmra.mxu3 %v189_v24 }
 0x2e2   :  { %v253_v27 = vpop.f32.mrf.mxu2  ;;  %v266_v28 = vpop.f32.mrf.mxu3 }
 0x2e3   :  { %v254_v29 = vadd.f32 %v253_v27, %v240_v25  ;;  %v267_v30 = vadd.f32 %v266_v28, %v241_v26 }
 0x2e5   :  { %v314_v31 = vmul.f32 -1.442695, %v254_v29  ;;  %v315_v32 = vmul.f32 -1.442695, %v267_v30 }
 0x2e7   :  { %326 = vpow2.f32 %v314_v31 }
 0x2e8   :  { %328 = vpow2.f32 %v315_v32 }
 0x2ea   :  { %v255_v33 = vpop.f32.mrf.mxu2  ;;  %v268_v34 = vpop.f32.mrf.mxu3 }
 0x2ed   :  { %v327_v35 = vpop.eup %326 }
 0x2ee   :  { %v329_v36 = vpop.eup %328  ;;  %v276_v37 = vadd.f32 1.0, %v327_v35 }
 0x2ef   :  { %v277_v38 = vadd.f32 1.0, %v329_v36 }
 0x2f0   :  { %330 = vrcp.f32 %v276_v37  ;;  %v289_v44 = vand.u32 2147483648, %v276_v37  ;;  %v287_v47 = vand.u32 2147483647, %v276_v37  ;;  %vm283_vm8 = vweird.f32 %v276_v37 }
 0x2f1   :  { %332 = vrcp.f32 %v277_v38  ;;  %v304_v48 = vand.u32 2147483648, %v277_v38  ;;  %v302_v50 = vand.u32 2147483647, %v277_v38  ;;  %vm298_vm10 = vweird.f32 %v277_v38 }
 0x2f2   :  { %v290_v52 = vor.u32 1.1754944e-38, %v289_v44  ;;  %vm288_vm11 = vcmp.eq.f32.partialorder %v287_v47, 8.507059e+37 }
 0x2f3   :  { %v305_v55 = vor.u32 1.1754944e-38, %v304_v48  ;;  %vm303_vm13 = vcmp.eq.f32.partialorder %v302_v50, 8.507059e+37 }
 0x2f6   :  { %v331_v39 = vpop.eup %330 }
 0x2f7   :  { %v333_v40 = vpop.eup %332  ;;  %v279_v41 = vmul.f32 %v331_v39, %v276_v37  ;;  %vm284_vm6 = vweird.f32 %v331_v39 }
 0x2f8   :  { %v294_v42 = vmul.f32 %v333_v40, %v277_v38  ;;  %vm299_vm7 = vweird.f32 %v333_v40  ;;  %vm285_vm9 = vmor %vm283_vm8, %vm284_vm6 }
 0x2f9   :  { %v280_v43 = vsub.f32 1.0, %v279_v41  ;;  %vm300_vm12 = vmor %vm298_vm10, %vm299_vm7 }
 0x2fa   :  { %v295_v45 = vsub.f32 1.0, %v294_v42 }
 0x2fb   :  { %v281_v46 = vmul.f32 %v331_v39, %v280_v43 }
 0x2fc   :  { %v296_v49 = vmul.f32 %v333_v40, %v295_v45 }
 0x2fd   :  { %v282_v51 = vadd.f32 %v331_v39, %v281_v46 }
 0x2fe   :  { %v297_v53 = vadd.f32 %v333_v40, %v296_v49 }
 0x2ff   :  { %v286_v54 = vsel %vm285_vm9, %v331_v39, %v282_v51 }
 0x300   :  { %v291_v56 = vsel %vm288_vm11, %v290_v52, %v286_v54  ;;  %v301_v57 = vsel %vm300_vm12, %v333_v40, %v297_v53 }
 0x301   :  { %308 = vst [vmem:[%s633_s11] sm:$0xff] %v291_v56  ;;  %v306_v58 = vsel %vm303_vm13, %v305_v55, %v301_v57 }
 0x302   :  { %309 = vst [vmem:[%s633_s11 + $0x8] sm:$0xff] %v306_v58 }

</bundles_post_ra>
